<compile_context>
chip_gen: v5e
topology: v5e:2x2
jax: 0.10.0
libtpu: 0.0.40
codegen_flags: <defaults>
</compile_context>

<pallas_src>
import numpy as np
import jax
import jax.numpy as jnp
from jax.experimental import pallas as pl
from jax.experimental.pallas import tpu as pltpu

# ---------------- irreps dimensions (fixed instantiation) ----------------
MUL_S = 8                                  # 8x0e scalars
MUL_V = 4                                  # 4x1o vectors
DIM_IN = MUL_S + 3 * MUL_V                 # 16
DIM_OUT = MUL_S + 3 * MUL_V                # 20
DIM_GATE_IN = MUL_S + MUL_V + 3 * MUL_V    # 24 (reference path only)

# Lane packing: G nodes per packed row so the node axis is lane-dense.
G = 8
LANES_IN = G * DIM_IN                      # 128
LANES_HID = G * DIM_OUT                    # 160  per node: [h_s(8) | h_v(12)]
LANES_OUT = G * DIM_OUT                    # 160  per node: [s(8) | v(12)]


# ---------------- normalize2mom constants (e3nn Activation) ----------------
def _second_moment(f):
    # deterministic trapezoidal quadrature of E[f(z)^2], z ~ N(0, 1)
    z = np.linspace(-12.0, 12.0, 200001)
    phi = np.exp(-0.5 * z * z) / np.sqrt(2.0 * np.pi)
    y = f(z) ** 2 * phi
    dz = np.diff(z)
    return float(np.sum(0.5 * (y[1:] + y[:-1]) * dz))


_np_sigmoid = lambda z: 1.0 / (1.0 + np.exp(-z))
C_SILU = float(1.0 / np.sqrt(_second_moment(lambda z: z * _np_sigmoid(z))))
C_SIG = float(1.0 / np.sqrt(_second_moment(_np_sigmoid)))
# TODO(synk): e3nn's normalize2mom uses a fixed-seed Monte-Carlo estimate of the
# second moment; we use deterministic quadrature (agrees to ~0.1%).


# ---------------- Pallas kernel (packed lane-dense layout) ----------------
def gate_activation_kernel(x_ref, w1_ref, wg_ref, w2_ref, o_ref):
    # x_ref:  (TB, 128)  8 nodes per row, 16 features each (row-major packing)
    # w1_ref: (128, 160) block-diag pre_gate -> per node [h_s(8) | h_v(12)]
    # wg_ref: (128, 160) block-diag pre_gate -> per node [h_s(8) | gate x3 (12)]
    # w2_ref: (160, 160) block-diag post_gate (normalize2mom consts folded in)
    # o_ref:  (TB, 160)  8 nodes per row, 20 outputs each
    x = x_ref[...].astype(jnp.float32)                 # bf16 I/O upcast; f32 no-op
    h = jnp.dot(x, w1_ref[...], preferred_element_type=jnp.float32)
    p = jax.nn.sigmoid(
        jnp.dot(x, wg_ref[...], preferred_element_type=jnp.float32))
    # scalar cols: h_s * sigmoid(h_s) = silu(h_s); vector cols: h_v * sigmoid(gate)
    act = h * p
    o_ref[...] = jnp.dot(act, w2_ref[...],
                         preferred_element_type=jnp.float32).astype(o_ref.dtype)


def _round_up(a, m):
    return (a + m - 1) // m * m


def gate_activation(x, kernel_params, *, tn=16384):
    """Module semantics: x is (N, 16) node-major, returns (N, 20).

    tn = node tile size.  Default 16384 nodes/step; sweep ~8K (v5e), ~16K (v6e),
    ~32K (v7x, raise vmem_limit_bytes to ~48 MiB there if you do).
    """
    w1_big, wg_big, w2_big = kernel_params
    n = x.shape[0]

    n_grp = _round_up(n, G)
    if n_grp != n:
        # TODO(synk): only hit when N % 8 != 0; callers should prefer N % 8 == 0
        # so this stays a pure-bitcast path.
        x = jnp.pad(x, ((0, n_grp - n), (0, 0)))
    r = n_grp // G
    # Row-major packing reshape: same linear element order as (N, 16), so it is
    # a bitcast (no HBM pass), unlike the transpose/pad the old wrapper did.
    x8 = x.reshape(r, LANES_IN)

    # sublane granularity of the (8,128)-style tiling: f32 -> 8, bf16 -> 16.
    sub = max(8, 32 // x.dtype.itemsize)
    tb = max(sub, (tn // G) // sub * sub)
    if r <= tb:
        tb_eff = r                   # single block; full-extent dim is allowed
    else:
        # keep >= 2 grid steps so the "parallel" axis can shard across the two
        # TensorCores on v7x; v5e/v6e are single-TC and don't care.
        tb_eff = min(tb, _round_up(pl.cdiv(r, 2), sub))
    grid = (pl.cdiv(r, tb_eff),)
    # The last block may be ragged: out-of-bounds rows hold unspecified data
    # that flows through sigmoid/matmul (harmless: no FP traps, errors stay
    # row-local) and their HBM writeback is masked by Pallas.  Do NOT "fix"
    # this by padding -- that re-adds a full HBM copy of the input.

    cost = pl.CostEstimate(
        flops=2 * r * (2 * LANES_IN * LANES_HID + LANES_HID * LANES_OUT),
        transcendentals=r * LANES_HID,
        bytes_accessed=x.dtype.itemsize * n_grp * (DIM_IN + DIM_OUT)
        + 4 * (2 * LANES_IN * LANES_HID + LANES_HID * LANES_OUT),
    )

    out = pl.pallas_call(
        gate_activation_kernel,
        out_shape=jax.ShapeDtypeStruct((r, LANES_OUT), x.dtype),
        grid_spec=pltpu.PrefetchScalarGridSpec(
            num_scalar_prefetch=0,
            grid=grid,
            in_specs=[
                pl.BlockSpec((tb_eff, LANES_IN), lambda i: (i, 0)),
                pl.BlockSpec((LANES_IN, LANES_HID), lambda i: (0, 0)),
                pl.BlockSpec((LANES_IN, LANES_HID), lambda i: (0, 0)),
                pl.BlockSpec((LANES_HID, LANES_OUT), lambda i: (0, 0)),
            ],
            out_specs=pl.BlockSpec((tb_eff, LANES_OUT), lambda i: (i, 0)),
        ),
        compiler_params=pltpu.CompilerParams(
            dimension_semantics=("parallel",),
            vmem_limit_bytes=32 * 1024 * 1024,   # covers v5e's 16 MiB default
        ),
        cost_estimate=cost,
    )(x8, w1_big, wg_big, w2_big)

    out = out.reshape(n_grp, DIM_OUT)            # free reshape back to node-major
    return out if n_grp == n else out[:n]


# ---------------- parameter setup (glue, plain JAX) ----------------
def build_params(key):
    k1, k2, k3, k4, k5 = jax.random.split(key, 5)
    # per-irrep weight blocks, N(0,1) like e3nn's internal weights
    w_pre_s = jax.random.normal(k1, (MUL_S, MUL_S), jnp.float32)   # 0e -> scalars
    w_pre_g = jax.random.normal(k2, (MUL_S, MUL_V), jnp.float32)   # 0e -> gates
    w_pre_v = jax.random.normal(k3, (MUL_V, MUL_V), jnp.float32)   # 1o -> 1o
    w_post_s = jax.random.normal(k4, (MUL_S, MUL_S), jnp.float32)  # 0e -> 0e
    w_post_v = jax.random.normal(k5, (MUL_V, MUL_V), jnp.float32)  # 1o -> 1o

    inv_s = 1.0 / np.sqrt(MUL_S)
    inv_v = 1.0 / np.sqrt(MUL_V)
    eye3 = jnp.eye(3, dtype=jnp.float32)
    rep3 = jnp.ones((1, 3), jnp.float32)

    # ----- dense reference matrices (e3nn [*, feature] convention) -----
    wpre = jnp.zeros((DIM_IN, DIM_GATE_IN), jnp.float32)
    wpre = wpre.at[:MUL_S, :MUL_S].set(w_pre_s * inv_s)
    wpre = wpre.at[:MUL_S, MUL_S:MUL_S + MUL_V].set(w_pre_g * inv_s)
    wpre = wpre.at[MUL_S:, MUL_S + MUL_V:].set(jnp.kron(w_pre_v, eye3) * inv_v)

    wpost = jnp.zeros((DIM_OUT, DIM_OUT), jnp.float32)
    wpost = wpost.at[:MUL_S, :MUL_S].set(w_post_s * inv_s)
    wpost = wpost.at[MUL_S:, MUL_S:].set(jnp.kron(w_post_v, eye3) * inv_v)

    e_mat = jnp.kron(jnp.eye(MUL_V, dtype=jnp.float32), rep3)       # (4, 12)

    # ----- kernel weights: per-node blocks, replicated block-diagonally -----
    # w1: x(16) -> [h_s(8) | h_v(12)]
    w1 = jnp.zeros((DIM_IN, DIM_OUT), jnp.float32)
    w1 = w1.at[:MUL_S, :MUL_S].set(w_pre_s * inv_s)
    w1 = w1.at[MUL_S:, MUL_S:].set(jnp.kron(w_pre_v, eye3) * inv_v)

    # wg: x(16) -> [h_s(8) | h_gate replicated x3 (12)]; sigmoid of this gives
    # silu's sigmoid on the scalar cols and the (pre-broadcast) gates on the
    # vector cols -- no in-kernel roll/select/broadcast needed.
    wg = jnp.zeros((DIM_IN, DIM_OUT), jnp.float32)
    wg = wg.at[:MUL_S, :MUL_S].set(w_pre_s * inv_s)
    wg = wg.at[:MUL_S, MUL_S:].set(jnp.kron(w_pre_g, rep3) * inv_s)

    # w2: post_gate with the normalize2mom constants folded in.
    w2 = jnp.zeros((DIM_OUT, DIM_OUT), jnp.float32)
    w2 = w2.at[:MUL_S, :MUL_S].set(w_post_s * inv_s * C_SILU)
    w2 = w2.at[MUL_S:, MUL_S:].set(jnp.kron(w_post_v, eye3) * inv_v * C_SIG)

    eye_g = jnp.eye(G, dtype=jnp.float32)
    w1_big = jnp.kron(eye_g, w1)     # (128, 160)
    wg_big = jnp.kron(eye_g, wg)     # (128, 160)
    w2_big = jnp.kron(eye_g, w2)     # (160, 160)

    return (w1_big, wg_big, w2_big), (wpre, wpost, e_mat)


# ---------------- pure-JAX reference (for correctness check) ----------------
def reference(x, wpre, wpost, e_mat):
    h = x @ wpre
    s = jax.nn.silu(h[:, :MUL_S]) * C_SILU
    g = jax.nn.sigmoid(h[:, MUL_S:MUL_S + MUL_V]) * C_SIG
    v = h[:, MUL_S + MUL_V:] * (g @ e_mat)
    return jnp.concatenate([s, v], axis=-1) @ wpost


if __name__ == "__main__":
    key = jax.random.PRNGKey(0)
    kx, kp = jax.random.split(key)

    N = 520          # small demo size; 65 packed rows -> exercises ragged tiling
    x = jax.random.normal(kx, (N, DIM_IN), jnp.float32)
    kernel_params, dense_params = build_params(kp)

    fwd = jax.jit(gate_activation, static_argnames=("tn",))
    ref = reference(x, *dense_params)

    # production-default tile (single block at this small N)
    out_default = jax.block_until_ready(fwd(x, kernel_params))
    # tiny tile: multi-step grid + ragged last block + "two step" split path
    out_small = jax.block_until_ready(fwd(x, kernel_params, tn=128))

    assert out_default.shape == (N, DIM_OUT)
    np.testing.assert_allclose(np.asarray(out_default), np.asarray(ref),
                               rtol=2e-3, atol=2e-3)
    np.testing.assert_allclose(np.asarray(out_small), np.asarray(ref),
                               rtol=2e-3, atol=2e-3)

    # bf16-in / bf16-out storage path (review suggestion): halves HBM traffic,
    # compute stays f32 inside the kernel.
    x_bf16 = x.astype(jnp.bfloat16)
    out_bf16 = jax.block_until_ready(fwd(x_bf16, kernel_params))
    ref_bf16 = reference(x_bf16.astype(jnp.float32), *dense_params)
    np.testing.assert_allclose(np.asarray(out_bf16.astype(jnp.float32)),
                               np.asarray(ref_bf16), rtol=5e-2, atol=5e-2)

    print("KERNEL_OK")
</pallas_src>

<mosaic_0001>
module attributes {stable_mosaic.version = 11 : i64} {
  func.func @gate_activation_kernel(%arg0: i32, %arg1: memref<65x160xf32, #tpu.memory_space<vmem>>, %arg2: memref<160x160xf32, #tpu.memory_space<vmem>>, %arg3: memref<160x160xf32, #tpu.memory_space<vmem>>, %arg4: memref<160x160xf32, #tpu.memory_space<vmem>>, %arg5: memref<65x160xf32, #tpu.memory_space<vmem>>) attributes {dimension_semantics = [#tpu.dimension_semantics<parallel>], iteration_bounds = array<i64: 1>, scalar_prefetch = 0 : i64, scratch_operands = 0 : i64, tpu.core_type = #tpu.core_type<tc>, window_params = [{transform_indices = @transform_0, window_bounds = array<i64: 65, 160>}, {pipeline_mode = #tpu.pipeline_mode<synchronous>, transform_indices = @transform_1, window_bounds = array<i64: 160, 160>}, {pipeline_mode = #tpu.pipeline_mode<synchronous>, transform_indices = @transform_2, window_bounds = array<i64: 160, 160>}, {pipeline_mode = #tpu.pipeline_mode<synchronous>, transform_indices = @transform_3, window_bounds = array<i64: 160, 160>}, {transform_indices = @transform_4, window_bounds = array<i64: 65, 160>}]} {
    %c0 = arith.constant 0 : index
    %c0_0 = arith.constant 0 : index
    %0 = vector.load %arg1[%c0, %c0_0] : memref<65x160xf32, #tpu.memory_space<vmem>>, vector<65x160xf32>
    %c0_1 = arith.constant 0 : index
    %c0_2 = arith.constant 0 : index
    %1 = vector.load %arg2[%c0_1, %c0_2] : memref<160x160xf32, #tpu.memory_space<vmem>>, vector<160x160xf32>
    %cst = arith.constant dense<0.000000e+00> : vector<65x160xf32>
    %2 = tpu.matmul %0, %1, %cst {dimension_numbers = #tpu.dot_dimension_numbers<[1], [0], [0], [1], [0, 0, 1, 1], [], []>} : vector<65x160xf32>, vector<160x160xf32>, vector<65x160xf32> -> vector<65x160xf32>
    %c0_3 = arith.constant 0 : index
    %c0_4 = arith.constant 0 : index
    %3 = vector.load %arg3[%c0_3, %c0_4] : memref<160x160xf32, #tpu.memory_space<vmem>>, vector<160x160xf32>
    %cst_5 = arith.constant dense<0.000000e+00> : vector<65x160xf32>
    %4 = tpu.matmul %0, %3, %cst_5 {dimension_numbers = #tpu.dot_dimension_numbers<[1], [0], [0], [1], [0, 0, 1, 1], [], []>} : vector<65x160xf32>, vector<160x160xf32>, vector<65x160xf32> -> vector<65x160xf32>
    %5 = arith.negf %4 : vector<65x160xf32>
    %6 = math.exp %5 : vector<65x160xf32>
    %cst_6 = arith.constant 1.000000e+00 : f32
    %7 = vector.broadcast %cst_6 : f32 to vector<65x160xf32>
    %8 = arith.addf %7, %6 : vector<65x160xf32>
    %9 = arith.divf %7, %8 : vector<65x160xf32>
    %10 = arith.mulf %2, %9 : vector<65x160xf32>
    %c0_7 = arith.constant 0 : index
    %c0_8 = arith.constant 0 : index
    %11 = vector.load %arg4[%c0_7, %c0_8] : memref<160x160xf32, #tpu.memory_space<vmem>>, vector<160x160xf32>
    %cst_9 = arith.constant dense<0.000000e+00> : vector<65x160xf32>
    %12 = tpu.matmul %10, %11, %cst_9 {dimension_numbers = #tpu.dot_dimension_numbers<[1], [0], [0], [1], [0, 0, 1, 1], [], []>} : vector<65x160xf32>, vector<160x160xf32>, vector<65x160xf32> -> vector<65x160xf32>
    %c0_10 = arith.constant 0 : index
    %c0_11 = arith.constant 0 : index
    %13 = vector.load %arg5[%c0_10, %c0_11] : memref<65x160xf32, #tpu.memory_space<vmem>>, vector<65x160xf32>
    tpu.vector_store %arg5[%c0_10, %c0_11], %12 {strides = array<i32>} : memref<65x160xf32, #tpu.memory_space<vmem>>, vector<65x160xf32>,
    return
  }
  func.func @transform_0(%arg0: i32) -> (i32, i32) {
    %c0_i32 = arith.constant 0 : i32
    %c0_i32_0 = arith.constant 0 : i32
    return %arg0, %c0_i32 : i32, i32
  }
  func.func @transform_1(%arg0: i32) -> (i32, i32) {
    %c0_i32 = arith.constant 0 : i32
    %c0_i32_0 = arith.constant 0 : i32
    %c0_i32_1 = arith.constant 0 : i32
    return %c0_i32, %c0_i32_0 : i32, i32
  }
  func.func @transform_2(%arg0: i32) -> (i32, i32) {
    %c0_i32 = arith.constant 0 : i32
    %c0_i32_0 = arith.constant 0 : i32
    %c0_i32_1 = arith.constant 0 : i32
    return %c0_i32, %c0_i32_0 : i32, i32
  }
  func.func @transform_3(%arg0: i32) -> (i32, i32) {
    %c0_i32 = arith.constant 0 : i32
    %c0_i32_0 = arith.constant 0 : i32
    %c0_i32_1 = arith.constant 0 : i32
    return %c0_i32, %c0_i32_0 : i32, i32
  }
  func.func @transform_4(%arg0: i32) -> (i32, i32) {
    %c0_i32 = arith.constant 0 : i32
    %c0_i32_0 = arith.constant 0 : i32
    return %arg0, %c0_i32 : i32, i32
  }
}

</mosaic_0001>

<bundles_post_ra>
// kernel: gate_activation.1
= control target key start
LH: loop header
LB: loop body
LE: loop exit
PB: predicated region body
PF: predicated region fallthrough
CT: control target
= control target key end

     0   :  { %vm75_vm0 = vcmask 261120   ;;  %s2386_s1 = inlined_call_operand.vmem [shape: f32[160,160], index: 1, kind: input, shape index: {}]   ;;  %s2387_s0 = inlined_call_operand.vmem [shape: f32[65,160], index: 0, kind: input, shape index: {}]   ;;  %s2388_s2 = inlined_call_operand.vmem [shape: f32[160,160], index: 2, kind: input, shape index: {}]   ;;  %s2389_s3 = inlined_call_operand.vmem [shape: f32[160,160], index: 3, kind: input, shape index: {}]   ;;  %s2390_s4 = inlined_call_operand.vmem [shape: f32[65,160], index: 4, kind: output, shape index: {}]  }
   0x1   :  { %v65_v0 = vld [vmem:[%s2386_s1 + $0xf0] sm:$0xff]  ;;  %v66_v1 = vld [vmem:[%s2386_s1 + $0xf8] sm:$0xff]  ;;  %v63_v3 = vld [vmem:[%s2386_s1 + $0xe0] sm:$0xff] }
   0x2   :  { %v74_v2 = vld [vmem:[%s2386_s1 + $0x138] sm:$0xff]  ;;  %103 = vmatpush.msra.mxu0 %v65_v0  ;;  %191 = vmatpush.msra.mxu2 %v66_v1  ;;  %v64_v4 = vld [vmem:[%s2386_s1 + $0xe8] sm:$0xff]  ;;  %v61_v6 = vld [vmem:[%s2386_s1 + $0xd0] sm:$0xff] }
   0x3   :  { %v72_v5 = vld [vmem:[%s2386_s1 + $0x128] sm:$0xff]  ;;  %247 = vmatpush.msra.mxu3 %v74_v2  ;;  %v62_v7 = vld [vmem:[%s2386_s1 + $0xd8] sm:$0xff]  ;;  %v73_v9 = vld [vmem:[%s2386_s1 + $0x130] sm:$0xff] }
   0x4   :  { %104 = vmatpush.msra.mxu0 %v63_v3  ;;  %192 = vmatpush.msra.mxu2 %v64_v4  ;;  %v70_v8 = vld [vmem:[%s2386_s1 + $0x118] sm:$0xff]  ;;  %v59_v10 = vld [vmem:[%s2386_s1 + $0xc0] sm:$0xff]  ;;  %v60_v11 = vld [vmem:[%s2386_s1 + $0xc8] sm:$0xff] }
   0x5   :  { %248 = vmatpush.msra.mxu3 %v72_v5  ;;  %159 = vmatpush.msra.mxu1 %v73_v9  ;;  %v68_v12 = vld [vmem:[%s2386_s1 + $0x108] sm:$0xff]  ;;  %v71_v13 = vld [vmem:[%s2386_s1 + $0x120] sm:$0xff]  ;;  %v57_v15 = vld [vmem:[%s2386_s1 + $0xb0] sm:$0xff] }
   0x6   :  { %105 = vmatpush.msra.mxu0 %v61_v6  ;;  %193 = vmatpush.msra.mxu2 %v62_v7  ;;  %v1355_v14 = vld [vmem:[%s2387_s0 + $0x8] sm:$0xff]  ;;  %v69_v16 = vld [vmem:[%s2386_s1 + $0x110] sm:$0xff]  ;;  %v58_v17 = vld [vmem:[%s2386_s1 + $0xb8] sm:$0xff] }
   0x7   :  { %249 = vmatpush.msra.mxu3 %v70_v8  ;;  %160 = vmatpush.msra.mxu1 %v71_v13  ;;  %v67_v18 = vld [vmem:[%s2386_s1 + $0x100] sm:$0xff]  ;;  %v56_v20 = vld [vmem:[%s2386_s1 + $0xa8] sm:$0xff]  ;;  %v53_v21 = vld [vmem:[%s2386_s1 + $0x90] sm:$0xff] }
   0x8   :  { %106 = vmatpush.msra.mxu0 %v59_v10  ;;  %194 = vmatpush.msra.mxu2 %v60_v11  ;;  %v55_v19 = vld [vmem:[%s2386_s1 + $0xa0] sm:$0xff]  ;;  %v54_v22 = vld [vmem:[%s2386_s1 + $0x98] sm:$0xff]  ;;  %v317_v23 = vld [vmem:[%s2388_s2 + $0x130] sm:$0xff] }
   0x9   :  { %250 = vmatpush.msra.mxu3 %v68_v12  ;;  %161 = vmatpush.msra.mxu1 %v69_v16  ;;  %v51_v24 = vld [vmem:[%s2386_s1 + $0x80] sm:$0xff]  ;;  %v52_v25 = vld [vmem:[%s2386_s1 + $0x88] sm:$0xff]  ;;  %v1397_v26 = vld [vmem:[%s2387_s0 + $0x18] sm:$0xff] }
   0xa   :  { %1130 = vmatmul.msk.f32.vlgmr.msra.gmra.mxu3 %vm75_vm0, %v1355_v14  ;;  %107 = vmatpush.msra.mxu0 %v57_v15  ;;  %v49_v27 = vld [vmem:[%s2386_s1 + $0x70] sm:$0xff]  ;;  %v50_v28 = vld [vmem:[%s2386_s1 + $0x78] sm:$0xff]  ;;  %v47_v30 = vld [vmem:[%s2386_s1 + $0x60] sm:$0xff] }
   0xb   :  { %195 = vmatpush.msra.mxu2 %v58_v17  ;;  %162 = vmatpush.msra.mxu1 %v67_v18  ;;  %v309_v29 = vld [vmem:[%s2388_s2 + $0xf0] sm:$0xff]  ;;  %v48_v31 = vld [vmem:[%s2386_s1 + $0x68] sm:$0xff]  ;;  %v307_v32 = vld [vmem:[%s2388_s2 + $0xe0] sm:$0xff] }
   0xc   :  { %108 = vmatpush.msra.mxu0 %v55_v19  ;;  %1121 = vmatmul.msk.f32.vlgmr.msra.gmra.mxu1 %vm75_vm0, %v1355_v14  ;;  %v315_v33 = vld [vmem:[%s2388_s2 + $0x120] sm:$0xff]  ;;  %v45_v34 = vld [vmem:[%s2386_s1 + $0x50] sm:$0xff]  ;;  %v46_v36 = vld [vmem:[%s2386_s1 + $0x58] sm:$0xff] }
   0xd   :  { %196 = vmatpush.msra.mxu2 %v56_v20  ;;  %375 = vmatpush.msrb.mxu3 %v317_v23  ;;  %v305_v35 = vld [vmem:[%s2388_s2 + $0xd0] sm:$0xff]  ;;  %v43_v37 = vld [vmem:[%s2386_s1 + $0x40] sm:$0xff]  ;;  %v44_v39 = vld [vmem:[%s2386_s1 + $0x48] sm:$0xff] }
   0xe   :  { %109 = vmatpush.msra.mxu0 %v53_v21  ;;  %319 = vmatpush.msrb.mxu1 %v309_v29  ;;  %v303_v38 = vld [vmem:[%s2388_s2 + $0xc0] sm:$0xff]  ;;  %v1445_v40 = vld [vmem:[%s2387_s0 + $0x28] sm:$0xff]  ;;  %v41_v41 = vld [vmem:[%s2386_s1 + $0x30] sm:$0xff] }
   0xf   :  { %197 = vmatpush.msra.mxu2 %v54_v22  ;;  %376 = vmatpush.msrb.mxu3 %v315_v33  ;;  %v42_v42 = vld [vmem:[%s2386_s1 + $0x38] sm:$0xff]  ;;  %v301_v43 = vld [vmem:[%s2388_s2 + $0xb0] sm:$0xff]  ;;  %v39_v44 = vld [vmem:[%s2386_s1 + $0x20] sm:$0xff] }
  0x10   :  { %110 = vmatpush.msra.mxu0 %v51_v24  ;;  %320 = vmatpush.msrb.mxu1 %v307_v32  ;;  %v40_v45 = vld [vmem:[%s2386_s1 + $0x28] sm:$0xff]  ;;  %v299_v46 = vld [vmem:[%s2388_s2 + $0xa0] sm:$0xff]  ;;  %v37_v47 = vld [vmem:[%s2386_s1 + $0x10] sm:$0xff] }
  0x11   :  { %198 = vmatpush.msra.mxu2 %v52_v25  ;;  %v313_v48 = vld [vmem:[%s2388_s2 + $0x110] sm:$0xff]  ;;  %v38_v49 = vld [vmem:[%s2386_s1 + $0x18] sm:$0xff]  ;;  %v35_v51 = vld [vmem:[%s2386_s1] sm:$0xff] }
  0x12   :  { %1131 = vmatmul.msk.f32.gmra.mxu3 %vm75_vm0, %v1397_v26  ;;  %111 = vmatpush.msra.mxu0 %v49_v27  ;;  %v297_v50 = vld [vmem:[%s2388_s2 + $0x90] sm:$0xff]  ;;  %v36_v52 = vld [vmem:[%s2386_s1 + $0x8] sm:$0xff]  ;;  %v1490_v53 = vld [vmem:[%s2387_s0] sm:$0xff] }
  0x13   :  { %199 = vmatpush.msra.mxu2 %v50_v28  ;;  %321 = vmatpush.msrb.mxu1 %v305_v35  ;;  %v1495_v54 = vld [vmem:[%s2387_s0 + $0x38] sm:$0xff]  ;;  %v308_v57 = vld [vmem:[%s2388_s2 + $0xe8] sm:$0xff]  ;;  %v295_v59 = vld [vmem:[%s2388_s2 + $0x80] sm:$0xff] }
  0x14   :  { %112 = vmatpush.msra.mxu0 %v47_v30  ;;  %1122 = vmatmul.msk.f32.gmra.mxu1 %vm75_vm0, %v1397_v26  ;;  %v318_v55 = vld [vmem:[%s2388_s2 + $0x138] sm:$0xff]  ;;  %v316_v58 = vld [vmem:[%s2388_s2 + $0x128] sm:$0xff]  ;;  %v293_v62 = vld [vmem:[%s2388_s2 + $0x70] sm:$0xff] }
  0x15   :  { %200 = vmatpush.msra.mxu2 %v48_v31  ;;  %322 = vmatpush.msrb.mxu1 %v303_v38  ;;  %v310_v56 = vld [vmem:[%s2388_s2 + $0xf8] sm:$0xff]  ;;  %v1530_v63 = vld [vmem:[%s2387_s0 + $0x10] sm:$0xff]  ;;  %v1535_v0 = vld [vmem:[%s2387_s0 + $0x48] sm:$0xff] }
  0x16   :  { %113 = vmatpush.msra.mxu0 %v45_v34  ;;  %377 = vmatpush.msrb.mxu3 %v313_v48  ;;  %v306_v60 = vld [vmem:[%s2388_s2 + $0xd8] sm:$0xff]  ;;  %v304_v1 = vld [vmem:[%s2388_s2 + $0xc8] sm:$0xff]  ;;  %v291_v3 = vld [vmem:[%s2388_s2 + $0x60] sm:$0xff] }
  0x17   :  { %201 = vmatpush.msra.mxu2 %v46_v36  ;;  %323 = vmatpush.msrb.mxu1 %v301_v43  ;;  %v314_v61 = vld [vmem:[%s2388_s2 + $0x118] sm:$0xff]  ;;  %v289_v4 = vld [vmem:[%s2388_s2 + $0x50] sm:$0xff]  ;;  %v300_v5 = vld [vmem:[%s2388_s2 + $0xa8] sm:$0xff] }
  0x18   :  { %114 = vmatpush.msra.mxu0 %v43_v37  ;;  %v302_v2 = vld [vmem:[%s2388_s2 + $0xb8] sm:$0xff]  ;;  %v287_v6 = vld [vmem:[%s2388_s2 + $0x40] sm:$0xff]  ;;  %v285_v9 = vld [vmem:[%s2388_s2 + $0x30] sm:$0xff] }
  0x19   :  { %202 = vmatpush.msra.mxu2 %v44_v39  ;;  %324 = vmatpush.msrb.mxu1 %v299_v46  ;;  %v311_v7 = vld [vmem:[%s2388_s2 + $0x100] sm:$0xff]  ;;  %v1575_v10 = vld [vmem:[%s2387_s0 + $0x58] sm:$0xff]  ;;  %v296_v12 = vld [vmem:[%s2388_s2 + $0x88] sm:$0xff] }
  0x1a   :  { %1132 = vmatmul.msk.f32.gmra.mxu3 %vm75_vm0, %v1445_v40  ;;  %115 = vmatpush.msra.mxu0 %v41_v41  ;;  %v1567_v8 = vld [vmem:[%s2387_s0 + $0x20] sm:$0xff]  ;;  %v298_v11 = vld [vmem:[%s2388_s2 + $0x98] sm:$0xff]  ;;  %v281_v15 = vld [vmem:[%s2388_s2 + $0x10] sm:$0xff] }
  0x1b   :  { %203 = vmatpush.msra.mxu2 %v42_v42  ;;  %325 = vmatpush.msrb.mxu1 %v297_v50  ;;  %v283_v13 = vld [vmem:[%s2388_s2 + $0x20] sm:$0xff]  ;;  %v294_v16 = vld [vmem:[%s2388_s2 + $0x78] sm:$0xff]  ;;  %v312_v18 = vld [vmem:[%s2388_s2 + $0x108] sm:$0xff] }
  0x1c   :  { %116 = vmatpush.msra.mxu0 %v39_v44  ;;  %1123 = vmatmul.msk.f32.gmra.mxu1 %vm75_vm0, %v1445_v40  ;;  %v279_v17 = vld [vmem:[%s2388_s2] sm:$0xff]  ;;  %v1607_v19 = vld [vmem:[%s2387_s0 + $0x30] sm:$0xff]  ;;  %v1612_v20 = vld [vmem:[%s2387_s0 + $0x68] sm:$0xff] }
  0x1d   :  { %204 = vmatpush.msra.mxu2 %v40_v45  ;;  %326 = vmatpush.msrb.mxu1 %v295_v59  ;;  %v292_v21 = vld [vmem:[%s2388_s2 + $0x68] sm:$0xff]  ;;  %v290_v22 = vld [vmem:[%s2388_s2 + $0x58] sm:$0xff]  ;;  %v25_v24 = vld [vmem:[%s2387_s0 + $0x40] sm:$0xff] }
  0x1e   :  { %117 = vmatpush.msra.mxu0 %v37_v47  ;;  %378 = vmatpush.msrb.mxu3 %v311_v7  ;;  %v288_v23 = vld [vmem:[%s2388_s2 + $0x48] sm:$0xff]  ;;  %v1635_v25 = vld [vmem:[%s2387_s0 + $0x78] sm:$0xff]  ;;  %v27_v30 = vld [vmem:[%s2387_s0 + $0x50] sm:$0xff] }
  0x1f   :  { %205 = vmatpush.msra.mxu2 %v38_v49  ;;  %327 = vmatpush.msrb.mxu1 %v293_v62  ;;  %v286_v27 = vld [vmem:[%s2388_s2 + $0x38] sm:$0xff]  ;;  %v284_v28 = vld [vmem:[%s2388_s2 + $0x28] sm:$0xff]  ;;  %v29_v33 = vld [vmem:[%s2387_s0 + $0x60] sm:$0xff] }
  0x20   :  { %118 = vmatpush.msra.mxu0 %v35_v51  ;;  %1193 = vmatpush.msra.mxu3 %v318_v55  ;;  %v282_v29 = vld [vmem:[%s2388_s2 + $0x18] sm:$0xff]  ;;  %v34_v31 = vld [vmem:[%s2387_s0 + $0x88] sm:$0x1]  ;;  %v31_v34 = vld [vmem:[%s2387_s0 + $0x70] sm:$0xff] }
  0x21   :  { %206 = vmatpush.msra.mxu2 %v36_v52  ;;  %119 = vmatmul.f32.vlgmr.msra.gmra.mxu0 %v1490_v53  ;;  %v280_v32 = vld [vmem:[%s2388_s2 + $0x8] sm:$0xff]  ;;  %v33_v35 = vld [vmem:[%s2387_s0 + $0x80] sm:$0x1]  ;;  %v885_v41 = vld [vmem:[%s2389_s3 + $0xf0] sm:$0xff] }
  0x22   :  { %207 = vmatmul.f32.vlgmr.msra.gmra.mxu2 %v1490_v53  ;;  %1133 = vmatmul.msk.f32.gmra.mxu3 %vm75_vm0, %v1495_v54  ;;  %v883_v46 = vld [vmem:[%s2389_s3 + $0xe0] sm:$0xff]  ;;  %v881_v51 = vld [vmem:[%s2389_s3 + $0xd0] sm:$0xff]  ;;  %v894_v52 = vld [vmem:[%s2389_s3 + $0x138] sm:$0xff] }
  0x23   :  { %463 = vmatpush.msrb.mxu2 %v318_v55  ;;  %407 = vmatpush.msrb.mxu0 %v310_v56  ;;  %v1766_v59 = vld [vmem:[%s2389_s3 + $0xe8] sm:$0xff] }
  0x24   :  { %1124 = vmatmul.msk.f32.gmra.mxu1 %vm75_vm0, %v1495_v54  ;;  %1194 = vmatpush.msra.mxu3 %v316_v58  ;;  %v1778_v62 = vld [vmem:[%s2389_s3 + $0xc8] sm:$0xff] }
  0x25   :  { %408 = vmatpush.msrb.mxu0 %v308_v57  ;;  %464 = vmatpush.msrb.mxu2 %v316_v58 }
  0x26   :  { %328 = vmatpush.msrb.mxu1 %v291_v3  ;;  %1195 = vmatpush.msra.mxu3 %v314_v61  ;;  %v1791_v3 = vld [vmem:[%s2389_s3 + $0xb8] sm:$0xff] }
  0x27   :  { %409 = vmatpush.msrb.mxu0 %v306_v60  ;;  %465 = vmatpush.msrb.mxu2 %v314_v61  ;;  %v1772_v61 = vld [vmem:[%s2389_s3 + $0xd8] sm:$0xff] }
  0x28   :  { %329 = vmatpush.msrb.mxu1 %v289_v4  ;;  %1196 = vmatpush.msra.mxu3 %v312_v18 }
  0x29   :  { %122 = vmatmul.f32.gmra.mxu0 %v1530_v63  ;;  %466 = vmatpush.msrb.mxu2 %v312_v18  ;;  %v1831_v18 = vld [vmem:[%s2389_s3 + $0x78] sm:$0xff] }
  0x2a   :  { %210 = vmatmul.f32.gmra.mxu2 %v1530_v63  ;;  %1134 = vmatmul.msk.f32.gmra.mxu3 %vm75_vm0, %v1535_v0 }
  0x2b   :  { %410 = vmatpush.msrb.mxu0 %v304_v1  ;;  %330 = vmatpush.msrb.mxu1 %v287_v6  ;;  %v1802_v6 = vld [vmem:[%s2389_s3 + $0xa8] sm:$0xff] }
  0x2c   :  { %1125 = vmatmul.msk.f32.gmra.mxu1 %vm75_vm0, %v1535_v0  ;;  %1066 = vmatpush.msra.mxu2 %v894_v52 }
  0x2d   :  { %411 = vmatpush.msrb.mxu0 %v302_v2  ;;  %331 = vmatpush.msrb.mxu1 %v285_v9  ;;  %v877_v2 = vld [vmem:[%s2389_s3 + $0xb0] sm:$0xff]  ;;  %v1811_v9 = vld [vmem:[%s2389_s3 + $0x98] sm:$0xff] }
  0x2f   :  { %412 = vmatpush.msrb.mxu0 %v300_v5  ;;  %332 = vmatpush.msrb.mxu1 %v283_v13  ;;  %v875_v5 = vld [vmem:[%s2389_s3 + $0xa0] sm:$0xff] }
  0x31   :  { %125 = vmatmul.f32.gmra.mxu0 %v1567_v8  ;;  %333 = vmatpush.msrb.mxu1 %v281_v15 }
  0x32   :  { %213 = vmatmul.f32.gmra.mxu2 %v1567_v8  ;;  %1135 = vmatmul.msk.f32.gmra.mxu3 %vm75_vm0, %v1575_v10 }
  0x33   :  { %413 = vmatpush.msrb.mxu0 %v298_v11  ;;  %334 = vmatpush.msrb.mxu1 %v279_v17  ;;  %v1820_v11 = vld [vmem:[%s2389_s3 + $0x88] sm:$0xff]  ;;  %v869_v17 = vld [vmem:[%s2389_s3 + $0x70] sm:$0xff] }
  0x34   :  { %1126 = vmatmul.msk.f32.gmra.mxu1 %vm75_vm0, %v1575_v10 }
  0x35   :  { %414 = vmatpush.msrb.mxu0 %v296_v12  ;;  %922 = vmatpush.msra.mxu1 %v885_v41 }
  0x37   :  { %415 = vmatpush.msrb.mxu0 %v294_v16  ;;  %923 = vmatpush.msra.mxu1 %v883_v46  ;;  %v859_v46 = vld [vmem:[%s2389_s3 + $0x20] sm:$0xff] }
  0x39   :  { %128 = vmatmul.f32.gmra.mxu0 %v1607_v19  ;;  %924 = vmatpush.msra.mxu1 %v881_v51  ;;  %v1894_v51 = vld [vmem:[%s2389_s3 + $0x18] sm:$0xff] }
  0x3a   :  { %216 = vmatmul.f32.gmra.mxu2 %v1607_v19  ;;  %1136 = vmatmul.msk.f32.gmra.mxu3 %vm75_vm0, %v1612_v20 }
  0x3b   :  { %416 = vmatpush.msrb.mxu0 %v292_v21  ;;  %v1842_v21 = vld [vmem:[%s2389_s3 + $0x68] sm:$0xff] }
  0x3c   :  { %1127 = vmatmul.msk.f32.gmra.mxu1 %vm75_vm0, %v1612_v20 }
  0x3d   :  { %417 = vmatpush.msrb.mxu0 %v290_v22 }
  0x3f   :  { %418 = vmatpush.msrb.mxu0 %v288_v23  ;;  %v865_v23 = vld [vmem:[%s2389_s3 + $0x50] sm:$0xff] }
  0x41   :  { %131 = vmatmul.f32.gmra.mxu0 %v25_v24 }
  0x42   :  { %219 = vmatmul.f32.gmra.mxu2 %v25_v24  ;;  %1137 = vmatmul.msk.f32.gmra.mxu3 %vm75_vm0, %v1635_v25 }
  0x43   :  { %419 = vmatpush.msrb.mxu0 %v286_v27 }
  0x44   :  { %1128 = vmatmul.msk.f32.gmra.mxu1 %vm75_vm0, %v1635_v25 }
  0x45   :  { %420 = vmatpush.msrb.mxu0 %v284_v28 }
  0x47   :  { %421 = vmatpush.msrb.mxu0 %v282_v29 }
  0x49   :  { %134 = vmatmul.f32.gmra.mxu0 %v27_v30 }
  0x4a   :  { %222 = vmatmul.f32.gmra.mxu2 %v27_v30  ;;  %1138 = vmatmul.msk.f32.gmra.mxu3 %vm75_vm0, %v34_v31 }
  0x4b   :  { %422 = vmatpush.msrb.mxu0 %v280_v32  ;;  %v1865_v32 = vld [vmem:[%s2389_s3 + $0x48] sm:$0xff] }
  0x4c   :  { %1129 = vmatmul.msk.f32.gmra.mxu1 %vm75_vm0, %v34_v31 }
  0x51   :  { %137 = vmatmul.f32.gmra.mxu0 %v29_v33 }
  0x52   :  { %225 = vmatmul.f32.gmra.mxu2 %v29_v33  ;;  %1139 = vmatmul.msk.f32.vlgmr.msrb.gmra.mxu3 %vm75_vm0, %v1355_v14 }
  0x54   :  { %335 = vmatmul.f32.vlgmr.msrb.gmra.mxu1 %v1490_v53 }
  0x59   :  { %140 = vmatmul.f32.gmra.mxu0 %v31_v34 }
  0x5a   :  { %228 = vmatmul.f32.gmra.mxu2 %v31_v34  ;;  %1140 = vmatmul.msk.f32.gmra.mxu3 %vm75_vm0, %v1397_v26 }
  0x5c   :  { %338 = vmatmul.f32.gmra.mxu1 %v1530_v63 }
  0x61   :  { %143 = vmatmul.f32.gmra.mxu0 %v33_v35 }
  0x62   :  { %231 = vmatmul.f32.gmra.mxu2 %v33_v35  ;;  %1141 = vmatmul.msk.f32.gmra.mxu3 %vm75_vm0, %v1445_v40 }
  0x64   :  { %341 = vmatmul.f32.gmra.mxu1 %v1567_v8 }
  0x69   :  { %423 = vmatmul.f32.vlgmr.msrb.gmra.mxu0 %v1490_v53  ;;  %v879_v53 = vld [vmem:[%s2389_s3 + $0xc0] sm:$0xff] }
  0x6a   :  { %1142 = vmatmul.msk.f32.gmra.mxu3 %vm75_vm0, %v1495_v54  ;;  %1148 = vmatmul.msk.f32.vlgmr.msrb.gmra.mxu2 %vm75_vm0, %v1355_v14 }
  0x6b   :  { %925 = vmatpush.msra.mxu1 %v879_v53 }
  0x6c   :  { %344 = vmatmul.f32.gmra.mxu1 %v1607_v19 }
  0x6d   :  { %926 = vmatpush.msra.mxu1 %v877_v2  ;;  %v1906_v2 = vld [vmem:[%s2389_s3 + $0x8] sm:$0xff] }
  0x6f   :  { %927 = vmatpush.msra.mxu1 %v875_v5 }
  0x71   :  { %426 = vmatmul.f32.gmra.mxu0 %v1530_v63 }
  0x72   :  { %1143 = vmatmul.msk.f32.gmra.mxu3 %vm75_vm0, %v1535_v0  ;;  %1149 = vmatmul.msk.f32.gmra.mxu2 %vm75_vm0, %v1397_v26 }
  0x74   :  { %347 = vmatmul.f32.gmra.mxu1 %v25_v24 }
  0x79   :  { %429 = vmatmul.f32.gmra.mxu0 %v1567_v8  ;;  %v873_v8 = vld [vmem:[%s2389_s3 + $0x90] sm:$0xff] }
  0x7a   :  { %1144 = vmatmul.msk.f32.gmra.mxu3 %vm75_vm0, %v1575_v10  ;;  %1150 = vmatmul.msk.f32.gmra.mxu2 %vm75_vm0, %v1445_v40 }
  0x7b   :  { %928 = vmatpush.msra.mxu1 %v873_v8 }
  0x7c   :  { %350 = vmatmul.f32.gmra.mxu1 %v27_v30 }
  0x81   :  { %432 = vmatmul.f32.gmra.mxu0 %v1607_v19 }
  0x82   :  { %1145 = vmatmul.msk.f32.gmra.mxu3 %vm75_vm0, %v1612_v20  ;;  %1151 = vmatmul.msk.f32.gmra.mxu2 %vm75_vm0, %v1495_v54  ;;  %v1756_v54 = vld [vmem:[%s2389_s3 + $0xf8] sm:$0xff] }
  0x83   :  { %1010 = vmatpush.msra.mxu0 %v1756_v54 }
  0x84   :  { %353 = vmatmul.f32.gmra.mxu1 %v29_v33 }
  0x85   :  { %1011 = vmatpush.msra.mxu0 %v1766_v59 }
  0x87   :  { %1012 = vmatpush.msra.mxu0 %v1772_v61 }
  0x89   :  { %435 = vmatmul.f32.gmra.mxu0 %v25_v24  ;;  %v1700_v14 = vpop.f32.mrf.mxu1  ;;  %v1851_v24 = vld [vmem:[%s2389_s3 + $0x58] sm:$0xff] }
  0x8a   :  { %1146 = vmatmul.msk.f32.gmra.mxu3 %vm75_vm0, %v1635_v25  ;;  %1152 = vmatmul.msk.f32.gmra.mxu2 %vm75_vm0, %v1535_v0 }
  0x8b   :  { %1013 = vmatpush.msra.mxu0 %v1778_v62 }
  0x8c   :  { %356 = vmatmul.f32.gmra.mxu1 %v31_v34 }
  0x8d   :  { %v1706_v26 = vpop.f32.mrf.mxu3  ;;  %1014 = vmatpush.msra.mxu0 %v1791_v3 }
  0x8f   :  { %1015 = vmatpush.msra.mxu0 %v1802_v6 }
  0x91   :  { %438 = vmatmul.f32.gmra.mxu0 %v27_v30  ;;  %v1708_v36 = vpop.f32.mrf.mxu1 }
  0x92   :  { %1147 = vmatmul.msk.f32.gmra.mxu3 %vm75_vm0, %v34_v31  ;;  %1153 = vmatmul.msk.f32.gmra.mxu2 %vm75_vm0, %v1575_v10  ;;  %v871_v10 = vld [vmem:[%s2389_s3 + $0x80] sm:$0xff] }
  0x93   :  { %1016 = vmatpush.msra.mxu0 %v1811_v9  ;;  %929 = vmatpush.msra.mxu1 %v871_v10 }
  0x94   :  { %359 = vmatmul.f32.gmra.mxu1 %v33_v35 }
  0x95   :  { %v1713_v37 = vpop.f32.mrf.mxu3  ;;  %1017 = vmatpush.msra.mxu0 %v1820_v11  ;;  %930 = vmatpush.msra.mxu1 %v869_v17 }
  0x97   :  { %1018 = vmatpush.msra.mxu0 %v1831_v18 }
  0x99   :  { %441 = vmatmul.f32.gmra.mxu0 %v29_v33  ;;  %v1715_v38 = vpop.f32.mrf.mxu1 }
  0x9a   :  { %1154 = vmatmul.msk.f32.gmra.mxu2 %vm75_vm0, %v1612_v20  ;;  %1156 = vmatmul.msk.f32.vlgmr.msra.gmra.mxu3 %vm75_vm0, %v34_v31  ;;  %v867_v20 = vld [vmem:[%s2389_s3 + $0x60] sm:$0xff] }
  0x9b   :  { %931 = vmatpush.msra.mxu1 %v867_v20  ;;  %1019 = vmatpush.msra.mxu0 %v1842_v21  ;;  %v863_v31 = vld [vmem:[%s2389_s3 + $0x40] sm:$0xff] }
  0x9d   :  { %v1720_v39 = vpop.f32.mrf.mxu3  ;;  %932 = vmatpush.msra.mxu1 %v865_v23  ;;  %1020 = vmatpush.msra.mxu0 %v1851_v24 }
  0x9e   :  { %v1722_v40 = vpop.f32.mrf.mxu0 }
  0x9f   :  { %933 = vmatpush.msra.mxu1 %v863_v31  ;;  %1021 = vmatpush.msra.mxu0 %v1865_v32 }
  0xa1   :  { %444 = vmatmul.f32.gmra.mxu0 %v31_v34  ;;  %v1727_v42 = vpop.f32.mrf.mxu1  ;;  %v861_v34 = vld [vmem:[%s2389_s3 + $0x30] sm:$0xff] }
  0xa2   :  { %1155 = vmatmul.msk.f32.gmra.mxu2 %vm75_vm0, %v1635_v25  ;;  %v892_v25 = vld [vmem:[%s2389_s3 + $0x128] sm:$0xff]  ;;  %934 = vmatpush.msra.mxu1 %v861_v34 }
  0xa3   :  { %1067 = vmatpush.msra.mxu2 %v892_v25 }
  0xa4   :  { %935 = vmatpush.msra.mxu1 %v859_v46 }
  0xa5   :  { %v1731_v43 = vpop.f32.mrf.mxu2  ;;  %v1733_v44 = vpop.f32.mrf.mxu3 }
  0xa6   :  { %v1735_v45 = vpop.f32.mrf.mxu0 }
  0xa9   :  { %447 = vmatmul.f32.gmra.mxu0 %v33_v35  ;;  %v176_v47 = vpop.f32.mrf.mxu1  ;;  %v1876_v35 = vld [vmem:[%s2389_s3 + $0x38] sm:$0xff] }
  0xaa   :  { %1022 = vmatpush.msra.mxu0 %v1876_v35 }
  0xad   :  { %v1740_v48 = vpop.f32.mrf.mxu2  ;;  %v264_v49 = vpop.f32.mrf.mxu3 }
  0xae   :  { %v1742_v50 = vpop.f32.mrf.mxu0 }
  0xb1   :  { %v179_v55 = vpop.f32.mrf.mxu1 }
  0xb5   :  { %v1759_v56 = vpop.f32.mrf.mxu2  ;;  %v267_v57 = vpop.f32.mrf.mxu3 }
  0xb6   :  { %v1761_v58 = vpop.f32.mrf.mxu0 }
  0xb9   :  { %v182_v60 = vpop.f32.mrf.mxu1 }
  0xbd   :  { %v1780_v63 = vpop.f32.mrf.mxu2  ;;  %v1782_v0 = vpop.f32.mrf.mxu3 }
  0xbe   :  { %v132_v1 = vpop.f32.mrf.mxu0 }
  0xbf   :  { %v1793_v4 = vadd.f32 %v176_v47, %v132_v1  ;;  %v1885_v47 = vld [vmem:[%s2389_s3 + $0x28] sm:$0xff]  ;;  %v855_v1 = vld [vmem:[%s2389_s3] sm:$0xff] }
  0xc0   :  { %1023 = vmatpush.msra.mxu0 %v1885_v47 }
  0xc1   :  { %v185_v7 = vpop.f32.mrf.mxu1 }
  0xc2   :  { %1024 = vmatpush.msra.mxu0 %v1894_v51 }
  0xc4   :  { %1025 = vmatpush.msra.mxu0 %v1906_v2 }
  0xc5   :  { %v220_v12 = vpop.f32.mrf.mxu2  ;;  %v273_v13 = vpop.f32.mrf.mxu3 }
  0xc6   :  { %v1823_v15 = vadd.f32 %v264_v49, %v220_v12  ;;  %v135_v16 = vpop.f32.mrf.mxu0  ;;  %v857_v49 = vld [vmem:[%s2389_s3 + $0x10] sm:$0xff] }
  0xc7   :  { %v1833_v19 = vadd.f32 %v179_v55, %v135_v16  ;;  %936 = vmatpush.msra.mxu1 %v857_v49 }
  0xc9   :  { %v188_v22 = vpop.f32.mrf.mxu1  ;;  %937 = vmatpush.msra.mxu1 %v855_v1 }
  0xcb   :  { %1197 = vmatpush.msrb.mxu1 %v1756_v54 }
  0xcd   :  { %v223_v27 = vpop.f32.mrf.mxu2  ;;  %v276_v28 = vpop.f32.mrf.mxu3  ;;  %1198 = vmatpush.msrb.mxu1 %v1766_v59 }
  0xce   :  { %v1857_v29 = vadd.f32 %v267_v57, %v223_v27  ;;  %v138_v30 = vpop.f32.mrf.mxu0 }
  0xcf   :  { %v1867_v33 = vadd.f32 %v182_v60, %v138_v30  ;;  %1199 = vmatpush.msrb.mxu1 %v1772_v61 }
  0xd1   :  { %v336_v41 = vpop.f32.mrf.mxu1  ;;  %1200 = vmatpush.msrb.mxu1 %v1778_v62 }
  0xd3   :  { %1201 = vmatpush.msrb.mxu1 %v1791_v3  ;;  %v890_v3 = vld [vmem:[%s2389_s3 + $0x118] sm:$0xff] }
  0xd4   :  { %1068 = vmatpush.msra.mxu2 %v890_v3 }
  0xd5   :  { %v226_v52 = vpop.f32.mrf.mxu2  ;;  %v380_v53 = vpop.f32.mrf.mxu3  ;;  %1202 = vmatpush.msrb.mxu1 %v1802_v6  ;;  %v893_v6 = vld [vmem:[%s2389_s3 + $0x130] sm:$0xff] }
  0xd6   :  { %v1898_v55 = vadd.f32 %v1782_v0, %v226_v52  ;;  %v381_v57 = vadd.f32 %v380_v53, %v336_v41  ;;  %v141_v60 = vpop.f32.mrf.mxu0  ;;  %978 = vmatpush.msrb.mxu3 %v893_v6  ;;  %v889_v52 = vld [vmem:[%s2389_s3 + $0x110] sm:$0xff] }
  0xd7   :  { %v1908_v5 = vadd.f32 %v185_v7, %v141_v60  ;;  %1203 = vmatpush.msrb.mxu1 %v1811_v9 }
  0xd8   :  { %v1157_v8 = vmul.f32 -1.442695, %v381_v57 }
  0xd9   :  { %v339_v0 = vpop.f32.mrf.mxu1  ;;  %1204 = vmatpush.msrb.mxu1 %v1820_v11  ;;  %v891_v11 = vld [vmem:[%s2389_s3 + $0x120] sm:$0xff] }
  0xda   :  { %1213 = vpow2.f32 %v1157_v8  ;;  %979 = vmatpush.msrb.mxu3 %v891_v11 }
  0xdb   :  { %1205 = vmatpush.msrb.mxu1 %v1831_v18 }
  0xdc   :  { %980 = vmatpush.msrb.mxu3 %v889_v52 }
  0xdd   :  { %v229_v10 = vpop.f32.mrf.mxu2  ;;  %v383_v12 = vpop.f32.mrf.mxu3  ;;  %1206 = vmatpush.msrb.mxu1 %v1842_v21 }
  0xde   :  { %v1914_v16 = vadd.f32 %v273_v13, %v229_v10  ;;  %v384_v17 = vadd.f32 %v383_v12, %v339_v0  ;;  %v144_v20 = vpop.f32.mrf.mxu0  ;;  %v888_v0 = vld [vmem:[%s2389_s3 + $0x108] sm:$0xff]  ;;  %v887_v10 = vld [vmem:[%s2389_s3 + $0x100] sm:$0xff] }
  0xdf   :  { %v1917_v7 = vadd.f32 %v188_v22, %v144_v20  ;;  %1207 = vmatpush.msrb.mxu1 %v1851_v24  ;;  %1069 = vmatpush.msra.mxu2 %v888_v0  ;;  %v171_v24 = vadd.f32 %v1715_v38, %v1742_v50  ;;  %v2008_v38 = vadd.f32 %v1727_v42, %v1761_v58 }
  0xe0   :  { %v1214_v23 = vpop.eup %1213  ;;  %v1159_v25 = vmul.f32 -1.442695, %v384_v17  ;;  %981 = vmatpush.msrb.mxu3 %v887_v10  ;;  %v1995_v10 = vadd.f32 %v1713_v37, %v1740_v48  ;;  %v2004_v37 = vadd.f32 %v1720_v39, %v1759_v56  ;;  %v2012_v48 = vadd.f32 %v1733_v44, %v1780_v63 }
  0xe1   :  { %v549_v54 = vadd.f32 1.0, %v1214_v23  ;;  %v342_v27 = vpop.f32.mrf.mxu1  ;;  %1208 = vmatpush.msrb.mxu1 %v1865_v32 }
  0xe2   :  { %1215 = vpow2.f32 %v1159_v25 }
  0xe3   :  { %1217 = vrcp.f32 %v549_v54  ;;  %v578_v46 = vand.u32 2147483648, %v549_v54  ;;  %vm572_vm1 = vweird.f32 %v549_v54  ;;  %v576_v18 = vand.u32 2147483647, %v549_v54  ;;  %1209 = vmatpush.msrb.mxu1 %v1876_v35 }
  0xe5   :  { %v232_v59 = vpop.f32.mrf.mxu2  ;;  %v386_v61 = vpop.f32.mrf.mxu3  ;;  %v579_v12 = vor.u32 1.1754944e-38, %v578_v46  ;;  %vm577_vm4 = vcmp.eq.f32.partialorder %v576_v18, 8.507059e+37  ;;  %1210 = vmatpush.msrb.mxu1 %v1885_v47 }
  0xe6   :  { %v1922_v13 = vadd.f32 %v276_v28, %v232_v59  ;;  %v387_v30 = vadd.f32 %v386_v61, %v342_v27  ;;  %v424_v62 = vpop.f32.mrf.mxu0  ;;  %v165_v59 = vadd.f32 %v1700_v14, %v1722_v40 }
  0xe7   :  { %1211 = vmatpush.msrb.mxu1 %v1894_v51 }
  0xe8   :  { %v1216_v22 = vpop.eup %1215  ;;  %v1161_v31 = vmul.f32 -1.442695, %v387_v30 }
  0xe9   :  { %v1218_v9 = vpop.eup %1217  ;;  %v1932_v34 = vadd.f32 1.0, %v1216_v22  ;;  %v345_v28 = vpop.f32.mrf.mxu1  ;;  %1212 = vmatpush.msrb.mxu1 %v1906_v2 }
  0xea   :  { %v568_v41 = vmul.f32 %v1218_v9, %v549_v54  ;;  %1219 = vpow2.f32 %v1161_v31  ;;  %vm573_vm2 = vweird.f32 %v1218_v9 }
  0xeb   :  { %1221 = vrcp.f32 %v1932_v34  ;;  %vm1951_vm3 = vmor %vm572_vm1, %vm573_vm2  ;;  %vm602_vm5 = vweird.f32 %v1932_v34  ;;  %v608_v14 = vand.u32 2147483648, %v1932_v34 }
  0xec   :  { %v569_v49 = vsub.f32 1.0, %v568_v41 }
  0xed   :  { %v389_v53 = vpop.f32.mrf.mxu3  ;;  %v468_v57 = vpop.f32.mrf.mxu2  ;;  %v609_v11 = vor.u32 1.1754944e-38, %v608_v14 }
  0xee   :  { %v390_v60 = vadd.f32 %v389_v53, %v345_v28  ;;  %v469_v1 = vadd.f32 %v468_v57, %v424_v62  ;;  %v427_v21 = vpop.f32.mrf.mxu0  ;;  %v570_v8 = vmul.f32 %v1218_v9, %v569_v49  ;;  %v606_v62 = vand.u32 2147483647, %v1932_v34 }
  0xef   :  { %v1978_v53 = vadd.f32 %v1706_v26, %v1731_v43 }
  0xf0   :  { %v1220_v17 = vpop.eup %1219  ;;  %v1163_v20 = vmul.f32 -1.442695, %v390_v60  ;;  %v1158_v23 = vmul.f32 -1.442695, %v469_v1  ;;  %v571_v25 = vadd.f32 %v1218_v9, %v570_v8  ;;  %vm607_vm8 = vcmp.eq.f32.partialorder %v606_v62, 8.507059e+37 }
  0xf1   :  { %v1222_v27 = vpop.eup %1221  ;;  %v1958_v32 = vadd.f32 1.0, %v1220_v17  ;;  %v348_v54 = vpop.f32.mrf.mxu1 }
  0xf2   :  { %1223 = vpow2.f32 %v1163_v20  ;;  %v575_v61 = vsel %vm1951_vm3, %v1218_v9, %v571_v25  ;;  %v598_v30 = vmul.f32 %v1222_v27, %v1932_v34  ;;  %vm603_vm6 = vweird.f32 %v1222_v27 }
  0xf3   :  { %1225 = vrcp.f32 %v1958_v32  ;;  %v580_v35 = vsel %vm577_vm4, %v579_v12, %v575_v61  ;;  %vm1971_vm7 = vmor %vm602_vm5, %vm603_vm6  ;;  %v168_v34 = vadd.f32 %v1708_v36, %v1735_v45  ;;  %vm632_vm9 = vweird.f32 %v1958_v32 }
  0xf4   :  { %1227 = vpow2.f32 %v1158_v23  ;;  %v837_v40 = vmul.f32 %v580_v35, %v165_v59  ;;  %v599_v22 = vsub.f32 1.0, %v598_v30  ;;  %v636_v8 = vand.u32 2147483647, %v1958_v32 }
  0xf5   :  { %v392_v31 = vpop.f32.mrf.mxu3  ;;  %v471_v3 = vpop.f32.mrf.mxu2  ;;  %v638_v36 = vand.u32 2147483648, %v1958_v32 }
  0xf6   :  { %v393_v6 = vadd.f32 %v392_v31, %v348_v54  ;;  %v472_v9 = vadd.f32 %v471_v3, %v427_v21  ;;  %938 = vmatmul.f32.vlgmr.msra.gmra.mxu1 %v837_v40  ;;  %1026 = vmatmul.f32.vlgmr.msra.gmra.mxu0 %v837_v40  ;;  %v430_v47 = vpop.f32.mrf.mxu0  ;;  %v600_v28 = vmul.f32 %v1222_v27, %v599_v22  ;;  %vm2021_vm12 = vcmp.eq.f32.partialorder %v636_v8, 8.507059e+37 }
  0xf7   :  { %v639_v61 = vor.u32 1.1754944e-38, %v638_v36 }
  0xf8   :  { %v1224_v46 = vpop.eup %1223  ;;  %v1165_v49 = vmul.f32 -1.442695, %v393_v6  ;;  %v1160_v51 = vmul.f32 -1.442695, %v472_v9  ;;  %v601_v18 = vadd.f32 %v1222_v27, %v600_v28 }
  0xf9   :  { %v1226_v52 = vpop.eup %1225  ;;  %v1982_v57 = vadd.f32 1.0, %v1224_v46  ;;  %v351_v60 = vpop.f32.mrf.mxu1 }
  0xfa   :  { %v1228_v1 = vpop.eup %1227  ;;  %1229 = vpow2.f32 %v1165_v49  ;;  %v605_v2 = vsel %vm1971_vm7, %v1222_v27, %v601_v18  ;;  %v628_v21 = vmul.f32 %v1226_v52, %v1958_v32  ;;  %vm633_vm10 = vweird.f32 %v1226_v52 }
  0xfb   :  { %1231 = vrcp.f32 %v1982_v57  ;;  %v1990_v26 = vadd.f32 1.0, %v1228_v1  ;;  %v610_v43 = vsel %vm607_vm8, %v609_v11, %v605_v2  ;;  %v666_v20 = vand.u32 2147483647, %v1982_v57  ;;  %vm2017_vm11 = vmor %vm632_vm9, %vm633_vm10 }
  0xfc   :  { %1233 = vpow2.f32 %v1160_v51  ;;  %v839_v45 = vmul.f32 %v610_v43, %v168_v34  ;;  %v629_v0 = vsub.f32 1.0, %v628_v21  ;;  %vm662_vm13 = vweird.f32 %v1982_v57 }
  0xfd   :  { %1235 = vrcp.f32 %v1990_v26  ;;  %v395_v12 = vpop.f32.mrf.mxu3  ;;  %v474_v17 = vpop.f32.mrf.mxu2  ;;  %v593_v23 = vand.u32 2147483648, %v1990_v26  ;;  %vm2030_vm14 = vcmp.eq.f32.partialorder %v666_v20, 8.507059e+37  ;;  %v668_v32 = vand.u32 2147483648, %v1982_v57 }
  0xfe   :  { %v396_v25 = vadd.f32 %v395_v12, %v351_v60  ;;  %v475_v27 = vadd.f32 %v474_v17, %v430_v47  ;;  %941 = vmatmul.f32.gmra.mxu1 %v839_v45  ;;  %1029 = vmatmul.f32.gmra.mxu0 %v839_v45  ;;  %v433_v59 = vpop.f32.mrf.mxu0  ;;  %v630_v54 = vmul.f32 %v1226_v52, %v629_v0  ;;  %vm587_vm15 = vweird.f32 %v1990_v26 }
  0xff   :  { %v2036_v40 = vor.u32 1.1754944e-38, %v593_v23  ;;  %v591_v47 = vand.u32 2147483647, %v1990_v26  ;;  %v669_v2 = vor.u32 1.1754944e-38, %v668_v32 }
 0x100   :  { %v1230_v30 = vpop.eup %1229  ;;  %v1167_v35 = vmul.f32 -1.442695, %v396_v25  ;;  %v1162_v39 = vmul.f32 -1.442695, %v475_v27  ;;  %v631_v56 = vadd.f32 %v1226_v52, %v630_v54 }
 0x101   :  { %v2025_v42 = vpop.eup %1231  ;;  %v2027_v44 = vadd.f32 1.0, %v1230_v30  ;;  %v354_v58 = vpop.f32.mrf.mxu1  ;;  %vm2054_vm3 = vcmp.eq.f32.partialorder %v591_v47, 8.507059e+37 }
 0x102   :  { %v1234_v14 = vpop.eup %1233  ;;  %1237 = vpow2.f32 %v1167_v35  ;;  %v635_v22 = vsel %vm2017_vm11, %v1226_v52, %v631_v56  ;;  %v658_v31 = vmul.f32 %v2025_v42, %v1982_v57  ;;  %vm663_vm1 = vweird.f32 %v2025_v42 }
 0x103   :  { %v1236_v3 = vpop.eup %1235  ;;  %1239 = vrcp.f32 %v2027_v44  ;;  %v2043_v6 = vadd.f32 1.0, %v1234_v14  ;;  %v640_v9 = vsel %vm2021_vm12, %v639_v61, %v635_v22  ;;  %v696_v51 = vand.u32 2147483647, %v2027_v44  ;;  %vm2063_vm5 = vmor %vm662_vm13, %vm663_vm1 }
 0x104   :  { %v583_v28 = vmul.f32 %v1236_v3, %v1990_v26  ;;  %1241 = vpow2.f32 %v1162_v39  ;;  %v841_v41 = vmul.f32 %v640_v9, %v171_v24  ;;  %v659_v49 = vsub.f32 1.0, %v658_v31 }
 0x105   :  { %1243 = vrcp.f32 %v2043_v6  ;;  %v398_v11 = vpop.f32.mrf.mxu3  ;;  %v477_v46 = vpop.f32.mrf.mxu2  ;;  %v698_v18 = vand.u32 2147483648, %v2027_v44  ;;  %vm588_vm2 = vweird.f32 %v1236_v3  ;;  %vm692_vm4 = vweird.f32 %v2027_v44 }
 0x106   :  { %v584_v52 = vsub.f32 1.0, %v583_v28  ;;  %v399_v34 = vadd.f32 %v398_v11, %v354_v58  ;;  %v478_v60 = vadd.f32 %v477_v46, %v433_v59  ;;  %944 = vmatmul.f32.gmra.mxu1 %v841_v41  ;;  %1032 = vmatmul.f32.gmra.mxu0 %v841_v41  ;;  %v436_v1 = vpop.f32.mrf.mxu0  ;;  %v660_v21 = vmul.f32 %v2025_v42, %v659_v49  ;;  %vm589_vm8 = vmor %vm587_vm15, %vm588_vm2 }
 0x107   :  { %v621_v12 = vand.u32 2147483647, %v2043_v6  ;;  %vm2073_vm6 = vcmp.eq.f32.partialorder %v696_v51, 8.507059e+37  ;;  %v2077_v59 = vor.u32 1.1754944e-38, %v698_v18  ;;  %vm617_vm7 = vweird.f32 %v2043_v6 }
 0x108   :  { %v1238_v43 = vpop.eup %1237  ;;  %v585_v36 = vmul.f32 %v1236_v3, %v584_v52  ;;  %v1169_v45 = vmul.f32 -1.442695, %v399_v34  ;;  %v1164_v0 = vmul.f32 -1.442695, %v478_v60  ;;  %v661_v25 = vadd.f32 %v2025_v42, %v660_v21 }
 0x109   :  { %v2068_v17 = vpop.eup %1239  ;;  %v2070_v20 = vadd.f32 1.0, %v1238_v43  ;;  %v357_v23 = vpop.f32.mrf.mxu1  ;;  %v623_v61 = vand.u32 2147483648, %v2043_v6  ;;  %vm2099_vm10 = vcmp.eq.f32.partialorder %v621_v12, 8.507059e+37 }
 0x10a   :  { %v1242_v57 = vpop.eup %1241  ;;  %1245 = vpow2.f32 %v1169_v45  ;;  %v586_v54 = vadd.f32 %v1236_v3, %v585_v36  ;;  %v688_v50 = vmul.f32 %v2068_v17, %v2027_v44  ;;  %v665_v39 = vsel %vm2063_vm5, %v2025_v42, %v661_v25 }
 0x10b   :  { %v2083_v30 = vpop.eup %1243  ;;  %1247 = vrcp.f32 %v2070_v20  ;;  %v2089_v35 = vadd.f32 1.0, %v1242_v57  ;;  %vm693_vm9 = vweird.f32 %v2068_v17  ;;  %v670_v62 = vsel %vm2030_vm14, %v669_v2, %v665_v39 }
 0x10c   :  { %v613_v56 = vmul.f32 %v2083_v30, %v2043_v6  ;;  %1249 = vpow2.f32 %v1164_v0  ;;  %v590_v58 = vsel %vm589_vm8, %v1236_v3, %v586_v54  ;;  %v843_v42 = vmul.f32 %v670_v62, %v2008_v38  ;;  %vm2118_vm12 = vmor %vm692_vm4, %vm693_vm9 }
 0x10d   :  { %1251 = vrcp.f32 %v2089_v35  ;;  %v401_v32 = vpop.f32.mrf.mxu3  ;;  %v480_v14 = vpop.f32.mrf.mxu2  ;;  %v595_v22 = vsel %vm2054_vm3, %v2036_v40, %v590_v58  ;;  %v689_v31 = vsub.f32 1.0, %v688_v50  ;;  %vm618_vm11 = vweird.f32 %v2083_v30 }
 0x10e   :  { %v402_v9 = vadd.f32 %v401_v32, %v357_v23  ;;  %v481_v47 = vadd.f32 %v480_v14, %v436_v1  ;;  %v838_v63 = vmul.f32 %v595_v22, %v1978_v53  ;;  %v439_v3 = vpop.f32.mrf.mxu0  ;;  %v614_v28 = vsub.f32 1.0, %v613_v56  ;;  %947 = vmatmul.f32.gmra.mxu1 %v843_v42  ;;  %1035 = vmatmul.f32.gmra.mxu0 %v843_v42  ;;  %vm619_vm2 = vmor %vm617_vm7, %vm618_vm11 }
 0x10f   :  { %v690_v41 = vmul.f32 %v2068_v17, %v689_v31  ;;  %v624_v11 = vor.u32 1.1754944e-38, %v623_v61  ;;  %v726_v38 = vand.u32 2147483647, %v2070_v20  ;;  %v728_v18 = vand.u32 2147483648, %v2070_v20 }
 0x110   :  { %v1246_v46 = vpop.eup %1245  ;;  %v1171_v49 = vmul.f32 -1.442695, %v402_v9  ;;  %v1166_v51 = vmul.f32 -1.442695, %v481_v47  ;;  %1175 = vmatmul.msk.f32.vlgmr.msrb.gmra.mxu3 %vm75_vm0, %v838_v63  ;;  %1184 = vmatmul.msk.f32.vlgmr.msra.gmra.mxu2 %vm75_vm0, %v838_v63  ;;  %v615_v40 = vmul.f32 %v2083_v30, %v614_v28  ;;  %vm722_vm13 = vweird.f32 %v2070_v20 }
 0x111   :  { %v2124_v52 = vpop.eup %1247  ;;  %v2126_v34 = vadd.f32 1.0, %v1246_v46  ;;  %v691_v60 = vadd.f32 %v2068_v17, %v690_v41  ;;  %vm2130_vm14 = vcmp.eq.f32.partialorder %v726_v38, 8.507059e+37  ;;  %vm647_vm1 = vweird.f32 %v2089_v35  ;;  %v360_v36 = vpop.f32.mrf.mxu1 }
 0x112   :  { %v1250_v44 = vpop.eup %1249  ;;  %1253 = vpow2.f32 %v1171_v49  ;;  %v616_v2 = vadd.f32 %v2083_v30, %v615_v40  ;;  %v718_v21 = vmul.f32 %v2124_v52, %v2070_v20  ;;  %vm723_vm15 = vweird.f32 %v2124_v52 }
 0x113   :  { %v1252_v8 = vpop.eup %1251  ;;  %1255 = vrcp.f32 %v2126_v34  ;;  %v2140_v43 = vadd.f32 1.0, %v1250_v44  ;;  %v695_v45 = vsel %vm2118_vm12, %v2068_v17, %v691_v60  ;;  %v729_v0 = vor.u32 1.1754944e-38, %v728_v18  ;;  %vm2168_vm4 = vmor %vm722_vm13, %vm723_vm15 }
 0x114   :  { %v643_v24 = vmul.f32 %v1252_v8, %v2089_v35  ;;  %1257 = vpow2.f32 %v1166_v51  ;;  %v700_v12 = vsel %vm2073_vm6, %v2077_v59, %v695_v45  ;;  %v620_v23 = vsel %vm619_vm2, %v2083_v30, %v616_v2 }
 0x115   :  { %1259 = vrcp.f32 %v2140_v43  ;;  %v404_v25 = vpop.f32.mrf.mxu3  ;;  %v483_v57 = vpop.f32.mrf.mxu2  ;;  %v845_v17 = vmul.f32 %v700_v12, %v1793_v4  ;;  %v625_v6 = vsel %vm2099_vm10, %v624_v11, %v620_v23  ;;  %v719_v54 = vsub.f32 1.0, %v718_v21 }
 0x116   :  { %v405_v50 = vadd.f32 %v404_v25, %v360_v36  ;;  %v484_v61 = vadd.f32 %v483_v57, %v439_v3  ;;  %v840_v39 = vmul.f32 %v625_v6, %v1995_v10  ;;  %v442_v56 = vpop.f32.mrf.mxu0  ;;  %v644_v62 = vsub.f32 1.0, %v643_v24 }
 0x117   :  { %950 = vmatmul.f32.gmra.mxu1 %v845_v17  ;;  %1038 = vmatmul.f32.gmra.mxu0 %v845_v17  ;;  %v720_v27 = vmul.f32 %v2124_v52, %v719_v54  ;;  %vm648_vm3 = vweird.f32 %v1252_v8  ;;  %v651_v59 = vand.u32 2147483647, %v2089_v35  ;;  %v653_v30 = vand.u32 2147483648, %v2089_v35 }
 0x118   :  { %v1254_v4 = vpop.eup %1253  ;;  %v1173_v58 = vmul.f32 -1.442695, %v405_v50  ;;  %v1168_v26 = vmul.f32 -1.442695, %v484_v61  ;;  %1176 = vmatmul.msk.f32.gmra.mxu3 %vm75_vm0, %v840_v39  ;;  %1185 = vmatmul.msk.f32.gmra.mxu2 %vm75_vm0, %v840_v39  ;;  %v645_v32 = vmul.f32 %v1252_v8, %v644_v62  ;;  %vm752_vm5 = vweird.f32 %v2126_v34  ;;  %vm649_vm8 = vmor %vm647_vm1, %vm648_vm3 }
 0x119   :  { %v1256_v14 = vpop.eup %1255  ;;  %v2173_v42 = vadd.f32 1.0, %v1254_v4  ;;  %v721_v22 = vadd.f32 %v2124_v52, %v720_v27  ;;  %vm2176_vm6 = vcmp.eq.f32.partialorder %v651_v59, 8.507059e+37  ;;  %v654_v9 = vor.u32 1.1754944e-38, %v653_v30 }
 0x11a   :  { %v1258_v47 = vpop.eup %1257  ;;  %v748_v20 = vmul.f32 %v1256_v14, %v2126_v34  ;;  %1261 = vpow2.f32 %v1173_v58  ;;  %v646_v63 = vadd.f32 %v1252_v8, %v645_v32  ;;  %vm753_vm7 = vweird.f32 %v1256_v14 }
 0x11b   :  { %v2181_v3 = vpop.eup %1259  ;;  %1263 = vrcp.f32 %v2173_v42  ;;  %v2184_v28 = vadd.f32 1.0, %v1258_v47  ;;  %v725_v41 = vsel %vm2168_vm4, %v2124_v52, %v721_v22  ;;  %v756_v11 = vand.u32 2147483647, %v2126_v34  ;;  %vm2214_vm12 = vmor %vm752_vm5, %vm753_vm7 }
 0x11c   :  { %v673_v38 = vmul.f32 %v2181_v3, %v2140_v43  ;;  %1265 = vpow2.f32 %v1168_v26  ;;  %v730_v46 = vsel %vm2130_vm14, %v729_v0, %v725_v41  ;;  %v650_v49 = vsel %vm649_vm8, %v1252_v8, %v646_v63 }
 0x11d   :  { %1267 = vrcp.f32 %v2184_v28  ;;  %v486_v51 = vpop.f32.mrf.mxu2  ;;  %v847_v53 = vmul.f32 %v730_v46, %v1833_v19  ;;  %v655_v40 = vsel %vm2176_vm6, %v654_v9, %v650_v49  ;;  %v749_v35 = vsub.f32 1.0, %v748_v20  ;;  %v492_v27 = vpop.f32.mrf.mxu3 }
 0x11e   :  { %v487_v18 = vadd.f32 %v486_v51, %v442_v56  ;;  %v842_v52 = vmul.f32 %v655_v40, %v2004_v37  ;;  %v445_v60 = vpop.f32.mrf.mxu0  ;;  %vm2202_vm9 = vcmp.eq.f32.partialorder %v756_v11, 8.507059e+37  ;;  %v758_v1 = vand.u32 2147483648, %v2126_v34 }
 0x11f   :  { %953 = vmatmul.f32.gmra.mxu1 %v847_v53  ;;  %1041 = vmatmul.f32.gmra.mxu0 %v847_v53  ;;  %v750_v2 = vmul.f32 %v1256_v14, %v749_v35  ;;  %v674_v21 = vsub.f32 1.0, %v673_v38  ;;  %vm677_vm10 = vweird.f32 %v2140_v43  ;;  %vm678_vm11 = vweird.f32 %v2181_v3 }
 0x120   :  { %v1262_v19 = vpop.eup %1261  ;;  %v1170_v8 = vmul.f32 -1.442695, %v487_v18  ;;  %1177 = vmatmul.msk.f32.gmra.mxu3 %vm75_vm0, %v842_v52  ;;  %1186 = vmatmul.msk.f32.gmra.mxu2 %vm75_vm0, %v842_v52  ;;  %v759_v36 = vor.u32 1.1754944e-38, %v758_v1  ;;  %v681_v45 = vand.u32 2147483647, %v2140_v43  ;;  %v683_v0 = vand.u32 2147483648, %v2140_v43  ;;  %vm679_vm15 = vmor %vm677_vm10, %vm678_vm11 }
 0x121   :  { %v1264_v24 = vpop.eup %1263  ;;  %v2220_v12 = vadd.f32 1.0, %v1262_v19  ;;  %v751_v23 = vadd.f32 %v1256_v14, %v750_v2  ;;  %v675_v25 = vmul.f32 %v2181_v3, %v674_v21  ;;  %vm782_vm13 = vweird.f32 %v2173_v42 }
 0x122   :  { %v1266_v57 = vpop.eup %1265  ;;  %v778_v34 = vmul.f32 %v1264_v24, %v2173_v42  ;;  %1269 = vpow2.f32 %v1170_v8  ;;  %vm2225_vm14 = vcmp.eq.f32.partialorder %v681_v45, 8.507059e+37  ;;  %v684_v6 = vor.u32 1.1754944e-38, %v683_v0 }
 0x123   :  { %v2229_v54 = vpop.eup %1267  ;;  %1271 = vrcp.f32 %v2220_v12  ;;  %v2232_v50 = vadd.f32 1.0, %v1266_v57  ;;  %v755_v61 = vsel %vm2214_vm12, %v1256_v14, %v751_v23  ;;  %v676_v39 = vadd.f32 %v2181_v3, %v675_v25 }
 0x124   :  { %v703_v56 = vmul.f32 %v2229_v54, %v2184_v28  ;;  %v760_v62 = vsel %vm2202_vm9, %v759_v36, %v755_v61  ;;  %v779_v59 = vsub.f32 1.0, %v778_v34  ;;  %vm783_vm1 = vweird.f32 %v1264_v24 }
 0x125   :  { %1273 = vrcp.f32 %v2232_v50  ;;  %v489_v30 = vpop.f32.mrf.mxu2  ;;  %v849_v4 = vmul.f32 %v760_v62, %v1867_v33  ;;  %v680_v58 = vsel %vm679_vm15, %v2181_v3, %v676_v39  ;;  %v786_v26 = vand.u32 2147483647, %v2173_v42  ;;  %vm2256_vm2 = vmor %vm782_vm13, %vm783_vm1 }
 0x126   :  { %v490_v10 = vadd.f32 %v489_v30, %v445_v60  ;;  %v685_v32 = vsel %vm2225_vm14, %v684_v6, %v680_v58  ;;  %v448_v14 = vpop.f32.mrf.mxu0  ;;  %v780_v22 = vmul.f32 %v1264_v24, %v779_v59  ;;  %v788_v43 = vand.u32 2147483648, %v2173_v42 }
 0x127   :  { %956 = vmatmul.f32.gmra.mxu1 %v849_v4  ;;  %v844_v31 = vmul.f32 %v685_v32, %v2012_v48  ;;  %1044 = vmatmul.f32.gmra.mxu0 %v849_v4  ;;  %v493_v9 = vadd.f32 %v492_v27, %v448_v14  ;;  %vm2260_vm3 = vcmp.eq.f32.partialorder %v786_v26, 8.507059e+37  ;;  %v704_v20 = vsub.f32 1.0, %v703_v56 }
 0x128   :  { %v1270_v63 = vpop.eup %1269  ;;  %v1172_v3 = vmul.f32 -1.442695, %v490_v10  ;;  %v781_v41 = vadd.f32 %v1264_v24, %v780_v22  ;;  %v789_v11 = vor.u32 1.1754944e-38, %v788_v43  ;;  %vm707_vm4 = vweird.f32 %v2184_v28 }
 0x129   :  { %v1272_v48 = vpop.eup %1271  ;;  %v2265_v38 = vadd.f32 1.0, %v1270_v63  ;;  %1178 = vmatmul.msk.f32.gmra.mxu3 %vm75_vm0, %v844_v31  ;;  %1187 = vmatmul.msk.f32.gmra.mxu2 %vm75_vm0, %v844_v31  ;;  %v1174_v42 = vmul.f32 -1.442695, %v493_v9  ;;  %v705_v46 = vmul.f32 %v2229_v54, %v704_v20  ;;  %vm708_vm5 = vweird.f32 %v2229_v54 }
 0x12a   :  { %v808_v49 = vmul.f32 %v1272_v48, %v2220_v12  ;;  %1275 = vpow2.f32 %v1172_v3  ;;  %v785_v51 = vsel %vm2256_vm2, %v1264_v24, %v781_v41  ;;  %v711_v53 = vand.u32 2147483647, %v2184_v28  ;;  %vm709_vm6 = vmor %vm707_vm4, %vm708_vm5 }
 0x12b   :  { %v1274_v40 = vpop.eup %1273  ;;  %1277 = vrcp.f32 %v2265_v38  ;;  %v790_v35 = vsel %vm2260_vm3, %v789_v11, %v785_v51  ;;  %v706_v18 = vadd.f32 %v2229_v54, %v705_v46  ;;  %v713_v52 = vand.u32 2147483648, %v2184_v28 }
 0x12c   :  { %v733_v60 = vmul.f32 %v1274_v40, %v2232_v50  ;;  %1279 = vpow2.f32 %v1174_v42  ;;  %v851_v44 = vmul.f32 %v790_v35, %v1908_v5  ;;  %vm712_vm7 = vcmp.eq.f32.partialorder %v711_v53, 8.507059e+37 }
 0x12d   :  { %v710_v1 = vsel %vm709_vm6, %v2229_v54, %v706_v18  ;;  %v714_v2 = vor.u32 1.1754944e-38, %v713_v52  ;;  %v809_v21 = vsub.f32 1.0, %v808_v49  ;;  %vm812_vm8 = vweird.f32 %v2220_v12 }
 0x12e   :  { %v734_v19 = vsub.f32 1.0, %v733_v60  ;;  %vm813_vm9 = vweird.f32 %v1272_v48  ;;  %v816_v8 = vand.u32 2147483647, %v2220_v12  ;;  %v818_v37 = vand.u32 2147483648, %v2220_v12 }
 0x12f   :  { %959 = vmatmul.f32.gmra.mxu1 %v851_v44  ;;  %v715_v36 = vsel %vm712_vm7, %v714_v2, %v710_v1  ;;  %1047 = vmatmul.f32.gmra.mxu0 %v851_v44  ;;  %v810_v5 = vmul.f32 %v1272_v48, %v809_v21  ;;  %vm738_vm10 = vweird.f32 %v1274_v40  ;;  %vm2289_vm11 = vmor %vm812_vm8, %vm813_vm9  ;;  %v741_v17 = vand.u32 2147483647, %v2232_v50 }
 0x130   :  { %v1276_v28 = vpop.eup %1275  ;;  %v846_v45 = vmul.f32 %v715_v36, %v1823_v15  ;;  %vm2293_vm12 = vcmp.eq.f32.partialorder %v816_v8, 8.507059e+37  ;;  %v819_v23 = vor.u32 1.1754944e-38, %v818_v37  ;;  %v735_v25 = vmul.f32 %v1274_v40, %v734_v19 }
 0x131   :  { %v1278_v57 = vpop.eup %1277  ;;  %v564_v12 = vadd.f32 1.0, %v1276_v28  ;;  %v811_v34 = vadd.f32 %v1272_v48, %v810_v5  ;;  %v743_v6 = vand.u32 2147483648, %v2232_v50  ;;  %vm737_vm13 = vweird.f32 %v2232_v50 }
 0x132   :  { %v1280_v54 = vpop.eup %1279  ;;  %v763_v15 = vmul.f32 %v1278_v57, %v2265_v38  ;;  %1179 = vmatmul.msk.f32.gmra.mxu3 %vm75_vm0, %v846_v45  ;;  %1188 = vmatmul.msk.f32.gmra.mxu2 %vm75_vm0, %v846_v45  ;;  %v736_v61 = vadd.f32 %v1274_v40, %v735_v25  ;;  %vm739_vm14 = vmor %vm737_vm13, %vm738_vm10  ;;  %vm742_vm15 = vcmp.eq.f32.partialorder %v741_v17, 8.507059e+37  ;;  %v773_v58 = vand.u32 2147483648, %v2265_v38 }
 0x133   :  { %1281 = vrcp.f32 %v564_v12  ;;  %v566_v39 = vadd.f32 1.0, %v1280_v54  ;;  %v815_v56 = vsel %vm2289_vm11, %v1272_v48, %v811_v34  ;;  %v744_v30 = vor.u32 1.1754944e-38, %v743_v6 }
 0x134   :  { %v764_v62 = vsub.f32 1.0, %v763_v15  ;;  %v820_v27 = vsel %vm2293_vm12, %v819_v23, %v815_v56  ;;  %v740_v59 = vsel %vm739_vm14, %v1274_v40, %v736_v61  ;;  %vm768_vm1 = vweird.f32 %v1278_v57 }
 0x135   :  { %1283 = vrcp.f32 %v566_v39  ;;  %v853_v4 = vmul.f32 %v820_v27, %v1917_v7  ;;  %v745_v50 = vsel %vm742_vm15, %v744_v30, %v740_v59  ;;  %v771_v10 = vand.u32 2147483647, %v2265_v38 }
 0x136   :  { %v765_v26 = vmul.f32 %v1278_v57, %v764_v62  ;;  %v848_v32 = vmul.f32 %v745_v50, %v1857_v29  ;;  %vm767_vm2 = vweird.f32 %v2265_v38  ;;  %v774_v43 = vor.u32 1.1754944e-38, %v773_v58 }
 0x137   :  { %962 = vmatmul.f32.gmra.mxu1 %v853_v4  ;;  %vm769_vm3 = vmor %vm767_vm2, %vm768_vm1  ;;  %vm772_vm4 = vcmp.eq.f32.partialorder %v771_v10, 8.507059e+37  ;;  %v801_v63 = vand.u32 2147483647, %v564_v12  ;;  %v803_v3 = vand.u32 2147483648, %v564_v12  ;;  %vm797_vm6 = vweird.f32 %v564_v12 }
 0x138   :  { %v766_v14 = vadd.f32 %v1278_v57, %v765_v26  ;;  %vm827_vm9 = vweird.f32 %v566_v39  ;;  %v831_v40 = vand.u32 2147483647, %v566_v39  ;;  %vm1115_vm13 = vcmask 253952  }
 0x139   :  { %v1282_v22 = vpop.eup %1281  ;;  %v804_v38 = vor.u32 1.1754944e-38, %v803_v3  ;;  %vm802_vm8 = vcmp.eq.f32.partialorder %v801_v63, 8.507059e+37 }
 0x13a   :  { %v793_v31 = vmul.f32 %v1282_v22, %v564_v12  ;;  %1180 = vmatmul.msk.f32.gmra.mxu3 %vm75_vm0, %v848_v32  ;;  %1189 = vmatmul.msk.f32.gmra.mxu2 %vm75_vm0, %v848_v32  ;;  %v770_v7 = vsel %vm769_vm3, %v1278_v57, %v766_v14  ;;  %vm798_vm5 = vweird.f32 %v1282_v22  ;;  %vm832_vm12 = vcmp.eq.f32.partialorder %v831_v40, 8.507059e+37 }
 0x13b   :  { %v1284_v9 = vpop.eup %1283  ;;  %v775_v33 = vsel %vm772_vm4, %v774_v43, %v770_v7  ;;  %vm799_vm7 = vmor %vm797_vm6, %vm798_vm5 }
 0x13c   :  { %v794_v47 = vsub.f32 1.0, %v793_v31  ;;  %v823_v20 = vmul.f32 %v1284_v9, %v566_v39  ;;  %v850_v41 = vmul.f32 %v775_v33, %v1898_v55  ;;  %vm828_vm10 = vweird.f32 %v1284_v9 }
 0x13d   :  { %v833_v55 = vand.u32 2147483648, %v566_v39  ;;  %vm829_vm11 = vmor %vm827_vm9, %vm828_vm10 }
 0x13e   :  { %v824_v29 = vsub.f32 1.0, %v823_v20  ;;  %v795_v11 = vmul.f32 %v1282_v22, %v794_v47 }
 0x13f   :  { %1050 = vmatmul.f32.vlgmr.msrb.gmra.mxu1 %v853_v4  ;;  %v834_v18 = vor.u32 1.1754944e-38, %v833_v55 }
 0x140   :  { %v796_v48 = vadd.f32 %v1282_v22, %v795_v11  ;;  %v825_v46 = vmul.f32 %v1284_v9, %v824_v29 }
 0x142   :  { %1181 = vmatmul.msk.f32.gmra.mxu3 %vm75_vm0, %v850_v41  ;;  %1190 = vmatmul.msk.f32.gmra.mxu2 %vm75_vm0, %v850_v41  ;;  %v800_v42 = vsel %vm799_vm7, %v1282_v22, %v796_v48  ;;  %v826_v53 = vadd.f32 %v1284_v9, %v825_v46 }
 0x143   :  { %v805_v49 = vsel %vm802_vm8, %v804_v38, %v800_v42 }
 0x144   :  { %v852_v51 = vmul.f32 %v805_v49, %v1914_v16  ;;  %v830_v35 = vsel %vm829_vm11, %v1284_v9, %v826_v53 }
 0x145   :  { %v835_v52 = vsel %vm832_vm12, %v834_v18, %v830_v35 }
 0x146   :  { %v854_v60 = vmul.f32 %v835_v52, %v1922_v13 }
 0x14a   :  { %1182 = vmatmul.msk.f32.gmra.mxu3 %vm75_vm0, %v852_v51  ;;  %1191 = vmatmul.msk.f32.gmra.mxu2 %vm75_vm0, %v852_v51 }
 0x152   :  { %1183 = vmatmul.msk.f32.gmra.mxu3 %vm75_vm0, %v854_v60  ;;  %1192 = vmatmul.msk.f32.gmra.mxu2 %vm75_vm0, %v854_v60 }
 0x173   :  { %v939_v16 = vpop.f32.mrf.mxu1  ;;  %v1027_v1 = vpop.f32.mrf.mxu0 }
 0x17b   :  { %v942_v44 = vpop.f32.mrf.mxu1  ;;  %v1030_v21 = vpop.f32.mrf.mxu0 }
 0x183   :  { %v945_v2 = vpop.f32.mrf.mxu1  ;;  %v1033_v13 = vpop.f32.mrf.mxu0 }
 0x18b   :  { %v948_v5 = vpop.f32.mrf.mxu1  ;;  %v1036_v12 = vpop.f32.mrf.mxu0 }
 0x193   :  { %v983_v19 = vpop.f32.mrf.mxu3  ;;  %v1071_v8 = vpop.f32.mrf.mxu2 }
 0x194   :  { %v984_v37 = vadd.f32 %v983_v19, %v939_v16  ;;  %v1072_v36 = vadd.f32 %v1071_v8, %v1027_v1  ;;  %v951_v23 = vpop.f32.mrf.mxu1  ;;  %v1039_v56 = vpop.f32.mrf.mxu0 }
 0x196   :  { %1098 = vst [vmem:[%s2390_s4] sm:$0xff] %v984_v37 }
 0x197   :  { %1099 = vst.msk [vmem:[%s2390_s4 + $0x8] sm:$0xff] %vm75_vm0, %v1072_v36 }
 0x19b   :  { %v986_v28 = vpop.f32.mrf.mxu3  ;;  %v1074_v45 = vpop.f32.mrf.mxu2 }
 0x19c   :  { %v987_v0 = vadd.f32 %v986_v28, %v942_v44  ;;  %v1075_v24 = vadd.f32 %v1074_v45, %v1030_v21  ;;  %v954_v6 = vpop.f32.mrf.mxu1  ;;  %v1042_v58 = vpop.f32.mrf.mxu0 }
 0x19e   :  { %1100 = vst [vmem:[%s2390_s4 + $0x10] sm:$0xff] %v987_v0 }
 0x19f   :  { %1101 = vst.msk [vmem:[%s2390_s4 + $0x18] sm:$0xff] %vm75_vm0, %v1075_v24 }
 0x1a3   :  { %v989_v25 = vpop.f32.mrf.mxu3  ;;  %v1077_v57 = vpop.f32.mrf.mxu2 }
 0x1a4   :  { %v990_v34 = vadd.f32 %v989_v25, %v945_v2  ;;  %v1078_v17 = vadd.f32 %v1077_v57, %v1033_v13  ;;  %v957_v59 = vpop.f32.mrf.mxu1  ;;  %v1045_v22 = vpop.f32.mrf.mxu0 }
 0x1a6   :  { %1102 = vst [vmem:[%s2390_s4 + $0x20] sm:$0xff] %v990_v34 }
 0x1a7   :  { %1103 = vst.msk [vmem:[%s2390_s4 + $0x28] sm:$0xff] %vm75_vm0, %v1078_v17 }
 0x1ac   :  { %v992_v54 = vpop.f32.mrf.mxu3  ;;  %v1080_v15 = vpop.f32.mrf.mxu2 }
 0x1ad   :  { %v993_v61 = vadd.f32 %v992_v54, %v948_v5  ;;  %v1081_v39 = vadd.f32 %v1080_v15, %v1036_v12  ;;  %v960_v14 = vpop.f32.mrf.mxu1  ;;  %v1048_v47 = vpop.f32.mrf.mxu0 }
 0x1af   :  { %1104 = vst [vmem:[%s2390_s4 + $0x30] sm:$0xff] %v993_v61 }
 0x1b0   :  { %1105 = vst.msk [vmem:[%s2390_s4 + $0x38] sm:$0xff] %vm75_vm0, %v1081_v39 }
 0x1b5   :  { %v995_v62 = vpop.f32.mrf.mxu3  ;;  %v1083_v27 = vpop.f32.mrf.mxu2 }
 0x1b6   :  { %v996_v30 = vadd.f32 %v995_v62, %v951_v23  ;;  %v1084_v4 = vadd.f32 %v1083_v27, %v1039_v56  ;;  %v963_v33 = vpop.f32.mrf.mxu1 }
 0x1b8   :  { %1106 = vst [vmem:[%s2390_s4 + $0x40] sm:$0xff] %v996_v30 }
 0x1b9   :  { %1107 = vst.msk [vmem:[%s2390_s4 + $0x48] sm:$0xff] %vm75_vm0, %v1084_v4 }
 0x1bd   :  { %v998_v50 = vpop.f32.mrf.mxu3  ;;  %v1086_v26 = vpop.f32.mrf.mxu2 }
 0x1be   :  { %v999_v10 = vadd.f32 %v998_v50, %v954_v6  ;;  %v1087_v32 = vadd.f32 %v1086_v26, %v1042_v58  ;;  %v1051_v41 = vpop.f32.mrf.mxu1 }
 0x1c0   :  { %1108 = vst [vmem:[%s2390_s4 + $0x50] sm:$0xff] %v999_v10 }
 0x1c1   :  { %1109 = vst.msk [vmem:[%s2390_s4 + $0x58] sm:$0xff] %vm75_vm0, %v1087_v32 }
 0x1c5   :  { %v1001_v43 = vpop.f32.mrf.mxu3  ;;  %v1089_v31 = vpop.f32.mrf.mxu2 }
 0x1c6   :  { %v1002_v7 = vadd.f32 %v1001_v43, %v957_v59  ;;  %v1090_v9 = vadd.f32 %v1089_v31, %v1045_v22 }
 0x1c8   :  { %1110 = vst [vmem:[%s2390_s4 + $0x60] sm:$0xff] %v1002_v7 }
 0x1c9   :  { %1111 = vst.msk [vmem:[%s2390_s4 + $0x68] sm:$0xff] %vm75_vm0, %v1090_v9 }
 0x1cd   :  { %v1004_v20 = vpop.f32.mrf.mxu3  ;;  %v1092_v63 = vpop.f32.mrf.mxu2 }
 0x1ce   :  { %v1005_v3 = vadd.f32 %v1004_v20, %v960_v14  ;;  %v1093_v29 = vadd.f32 %v1092_v63, %v1048_v47 }
 0x1d0   :  { %1112 = vst [vmem:[%s2390_s4 + $0x70] sm:$0xff] %v1005_v3 }
 0x1d1   :  { %1113 = vst.msk [vmem:[%s2390_s4 + $0x78] sm:$0xff] %vm75_vm0, %v1093_v29 }
 0x1d5   :  { %v1007_v11 = vpop.f32.mrf.mxu3  ;;  %v1095_v48 = vpop.f32.mrf.mxu2 }
 0x1d6   :  { %v1008_v38 = vadd.f32 %v1007_v11, %v963_v33  ;;  %v1096_v42 = vadd.f32 %v1095_v48, %v1051_v41 }
 0x1d8   :  { %1114 = vst [vmem:[%s2390_s4 + $0x80] sm:$0x1] %v1008_v38 }
 0x1d9   :  { %1116 = vst.msk [vmem:[%s2390_s4 + $0x88] sm:$0x1] %vm1115_vm13, %v1096_v42 }

</bundles_post_ra>
